<compile_context>
chip_gen: v7x
topology: tpu7x:2x2x1
jax: 0.10.0
libtpu: 0.0.40
codegen_flags: <defaults>
</compile_context>

<pallas_src>
import functools

import jax
import jax.numpy as jnp
from jax.experimental import pallas as pl
from jax.experimental.pallas import tpu as pltpu

_LANE = 128


def _pick_vmem_limit_bytes() -> int:
    """Chip-adaptive scoped-VMEM limit: 64 MiB on v5e/v6e (128 MiB physical VMEM),
    48 MiB on v7x (64 MiB physical). Falls back to the v7x-safe value."""
    try:
        phys = int(getattr(pltpu.get_tpu_info(), "vmem_capacity_bytes", 0))
    except Exception:
        phys = 0
    return (64 << 20) if phys >= (128 << 20) else (48 << 20)


_VMEM_LIMIT_BYTES = _pick_vmem_limit_bytes()


def _softsign_kernel(x_ref, o_ref, *, approx_recip: bool):
    x = x_ref[...]
    if approx_recip:
        # Narrow dtypes: keep the kernel memory-bound on v7x by pushing the reciprocal
        # onto the EUP slot instead of a VALU Newton-Raphson divide.
        xf = x.astype(jnp.float32)
        inv = pl.reciprocal(1.0 + jnp.abs(xf), approx=True)
        o_ref[...] = (xf * inv).astype(o_ref.dtype)
    else:
        o_ref[...] = x / (1.0 + jnp.abs(x))


def _softsign_slab(x2d, *, tile_rows: int, approx_recip: bool):
    rows, lanes = x2d.shape
    grid = (pl.cdiv(rows, tile_rows),)
    return pl.pallas_call(
        functools.partial(_softsign_kernel, approx_recip=approx_recip),
        out_shape=jax.ShapeDtypeStruct((rows, lanes), x2d.dtype),
        grid_spec=pltpu.PrefetchScalarGridSpec(
            num_scalar_prefetch=0,
            grid=grid,
            in_specs=[pl.BlockSpec((tile_rows, lanes), lambda i: (i, 0))],
            out_specs=pl.BlockSpec((tile_rows, lanes), lambda i: (i, 0)),
        ),
        compiler_params=pltpu.CompilerParams(
            dimension_semantics=("parallel",),   # megacore shards the >=2-step grid
            vmem_limit_bytes=_VMEM_LIMIT_BYTES,
        ),
    )(x2d)


@functools.partial(jax.jit, static_argnames=("target_block_bytes",))
def softsign(x: jax.Array, *, target_block_bytes: int = 8 << 20) -> jax.Array:
    """Elementwise softsign y = x / (1 + |x|) via a Pallas TPU kernel (any shape)."""
    orig_shape = x.shape
    dtype = x.dtype
    itemsize = jnp.dtype(dtype).itemsize
    approx_recip = bool(jnp.issubdtype(dtype, jnp.floating)) and itemsize < 4

    flat = x.reshape(-1)                      # layout no-op under jit
    n = flat.shape[0]

    # 128-aligned prefix -> zero-copy kernel path; the (<128-elem) tail is handled in
    # plain jnp so we never pad/copy the whole array.
    n_main = (n // _LANE) * _LANE
    if n_main == 0:
        # Tiny input: not worth a kernel launch / padded tile.
        return (flat / (1.0 + jnp.abs(flat))).reshape(orig_shape)

    # Widest lane count dividing the prefix -> lane-dense 2D slab, free reshape.
    lanes = _LANE
    for cand in (1024, 512, 256):
        if n_main % cand == 0:
            lanes = cand
            break
    rows = n_main // lanes

    # Row alignment follows sublane packing: 8 (f32), 16 (bf16/f16), 32 (8-bit).
    row_align = 8 * max(1, 4 // itemsize)
    max_tile_rows = max(
        row_align,
        (target_block_bytes // (lanes * itemsize)) // row_align * row_align,
    )
    if rows < 2 * row_align:
        tile_rows = rows                      # single full-extent block
    else:
        # Guarantee >= 2 grid steps so a 2-TC chip (v7x) can split the work, while
        # capping at ~target_block_bytes so large tensors stream in big blocks.
        half_rows = -(-rows // 2)
        half_aligned = -(-half_rows // row_align) * row_align
        tile_rows = min(max_tile_rows, half_aligned)

    main = _softsign_slab(
        flat[:n_main].reshape(rows, lanes),
        tile_rows=tile_rows,
        approx_recip=approx_recip,
    ).reshape(-1)

    if n_main == n:
        return main.reshape(orig_shape)

    tail = flat[n_main:]
    if approx_recip:
        tf = tail.astype(jnp.float32)
        tail_out = (tf / (1.0 + jnp.abs(tf))).astype(dtype)
    else:
        tail_out = tail / (1.0 + jnp.abs(tail))
    return jnp.concatenate([main, tail_out]).reshape(orig_shape)


# TODO(synk): only the forward pass is implemented; the custom autograd backward
# (grad / (1 + |x|)^2) is not wired up as a Pallas VJP.


if __name__ == "__main__":
    root = jax.random.PRNGKey(0)
    k0, k1, k2, k3 = jax.random.split(root, 4)

    # 1) Primary: small NCHW f32 tensor (exact-divide path, single full block).
    x = jax.random.normal(k0, (2, 4, 16, 16), dtype=jnp.float32) * 3.0
    y = jax.block_until_ready(softsign(x))
    ref = x / (1.0 + jnp.abs(x))
    assert y.shape == x.shape and y.dtype == x.dtype
    assert jnp.allclose(y, ref, atol=1e-6, rtol=1e-6), "mismatch (f32 aligned)"

    # 2) f32 slab large enough to force a >=2-step grid (megacore-splittable on v7x).
    x = jax.random.normal(k1, (4, 8, 32, 32), dtype=jnp.float32) * 2.0
    y = jax.block_until_ready(softsign(x))
    ref = x / (1.0 + jnp.abs(x))
    assert jnp.allclose(y, ref, atol=1e-6, rtol=1e-6), "mismatch (f32 multi-block)"

    # 3) Odd size: exercises the aligned-prefix kernel + jnp-tail path and a ragged
    #    multi-block grid (tiny block size forces grid=4 with a partial last block).
    x = jax.random.normal(k2, (3, 5, 17, 13), dtype=jnp.float32) * 2.0
    y = jax.block_until_ready(softsign(x, target_block_bytes=8 * 128 * 4))
    ref = x / (1.0 + jnp.abs(x))
    assert y.shape == x.shape and jnp.allclose(y, ref, atol=1e-6, rtol=1e-6), \
        "mismatch (ragged / tail path)"

    # 4) bf16: approximate-reciprocal (EUP) path; compare in f32 with a loose tolerance
    #    since approx=True trades ~1e-3 relative error for VALU headroom.
    x = (jax.random.normal(k3, (2, 4, 16, 16), dtype=jnp.float32) * 3.0).astype(jnp.bfloat16)
    y = jax.block_until_ready(softsign(x))
    xf = x.astype(jnp.float32)
    ref = xf / (1.0 + jnp.abs(xf))
    assert y.dtype == jnp.bfloat16 and y.shape == x.shape
    assert jnp.allclose(y.astype(jnp.float32), ref, atol=2e-2, rtol=2e-2), \
        "mismatch (bf16 approx-reciprocal path)"

    print("KERNEL_OK")
</pallas_src>

<mosaic_0001>
module attributes {stable_mosaic.version = 11 : i64} {
  func.func @_softsign_kernel(%arg0: i32, %arg1: memref<2x1024xf32, #tpu.memory_space<vmem>>, %arg2: memref<2x1024xf32, #tpu.memory_space<vmem>>) attributes {dimension_semantics = [#tpu.dimension_semantics<parallel>], iteration_bounds = array<i64: 1>, scalar_prefetch = 0 : i64, scratch_operands = 0 : i64, tpu.core_type = #tpu.core_type<tc>, window_params = [{transform_indices = @transform_0, window_bounds = array<i64: 2, 1024>}, {transform_indices = @transform_1, window_bounds = array<i64: 2, 1024>}]} {
    %c0 = arith.constant 0 : index
    %c0_0 = arith.constant 0 : index
    %0 = vector.load %arg1[%c0, %c0_0] : memref<2x1024xf32, #tpu.memory_space<vmem>>, vector<2x1024xf32>
    %1 = math.absf %0 : vector<2x1024xf32>
    %cst = arith.constant 1.000000e+00 : f32
    %2 = vector.broadcast %cst : f32 to vector<2x1024xf32>
    %3 = arith.addf %2, %1 : vector<2x1024xf32>
    %4 = arith.divf %0, %3 : vector<2x1024xf32>
    %c0_1 = arith.constant 0 : index
    %c0_2 = arith.constant 0 : index
    %5 = vector.load %arg2[%c0_1, %c0_2] : memref<2x1024xf32, #tpu.memory_space<vmem>>, vector<2x1024xf32>
    tpu.vector_store %arg2[%c0_1, %c0_2], %4 {strides = array<i32>} : memref<2x1024xf32, #tpu.memory_space<vmem>>, vector<2x1024xf32>,
    return
  }
  func.func @transform_0(%arg0: i32) -> (i32, i32) {
    %c0_i32 = arith.constant 0 : i32
    %c0_i32_0 = arith.constant 0 : i32
    return %arg0, %c0_i32 : i32, i32
  }
  func.func @transform_1(%arg0: i32) -> (i32, i32) {
    %c0_i32 = arith.constant 0 : i32
    %c0_i32_0 = arith.constant 0 : i32
    return %arg0, %c0_i32 : i32, i32
  }
}

</mosaic_0001>

<bundles_post_ra>
// kernel: softsign.1
= control target key start
LH: loop header
LB: loop body
LE: loop exit
PB: predicated region body
PF: predicated region fallthrough
CT: control target
= control target key end

     0   :  { %s50_s0 = inlined_call_operand.vmem [shape: f32[2,1024], index: 0, kind: input, shape index: {}]   ;;  %s51_s1 = inlined_call_operand.vmem [shape: f32[2,1024], index: 1, kind: output, shape index: {}]  }
   0x1   :  { %v8_v0 = vld [vmem:[%s50_s0] sm:$0xff]  ;;  %v9_v1 = vld [vmem:[%s50_s0 + $0x8] sm:$0xff] }
   0x2   :  { %v10_v2 = vand.u32 2147483647, %v8_v0  ;;  %v11_v3 = vand.u32 2147483647, %v9_v1 }
   0x4   :  { %v12_v4 = vadd.f32 1.0, %v10_v2  ;;  %v13_v5 = vadd.f32 1.0, %v11_v3 }
   0x6   :  { %24 = vrcp.f32 %v12_v4 }
   0x7   :  { %26 = vrcp.f32 %v13_v5 }
  0x10   :  { %v25_v6 = vpop.eup %24 }
  0x11   :  { %v27_v7 = vpop.eup %26  ;;  %v15_v8 = vmul.f32 %v25_v6, %v8_v0 }
  0x12   :  { %v17_v9 = vmul.f32 %v27_v7, %v9_v1 }
  0x13   :  { %18 = vst [vmem:[%s51_s1] sm:$0xff] %v15_v8 }
  0x14   :  { %19 = vst [vmem:[%s51_s1 + $0x8] sm:$0xff] %v17_v9 }

</bundles_post_ra>
